<compile_context>
chip_gen: v7x
topology: tpu7x:2x2x1
jax: 0.10.0
libtpu: 0.0.40
codegen_flags: <defaults>
</compile_context>

<pallas_src>
import numpy as np
import jax
import jax.numpy as jnp
from jax.experimental import pallas as pl
from jax.experimental.pallas import tpu as pltpu

_LOG_SIGMA_MIN = -20.0
_LOG_SIGMA_MAX = 2.0
_HALF_LOG_2PI = 0.5 * float(np.log(2.0 * np.pi))
_LOG_2 = float(np.log(2.0))
_HEAD_PAD = 256  # fused head width: mu in lanes [0, A), log_sigma in lanes [128, 128+A)


def _softplus(z):
    # numerically stable softplus = max(z, 0) + log1p(exp(-|z|))
    return jnp.maximum(z, 0.0) + jnp.log1p(jnp.exp(-jnp.abs(z)))


def _round_up(n, m):
    return ((n + m - 1) // m) * m


def _pi_fc_kernel(x_ref, w1_ref, b1_ref, w2_ref, b2_ref, wh_ref, bh_ref, eps_ref,
                  out_ref):
    A = eps_ref.shape[1]

    # Trunk: nn.Sequential(Linear(obs,384), ReLU, Linear(384,512), ReLU).
    # bf16 operands, f32 MXU accumulation; y1 cast to bf16 at the ReLU so only the
    # half-width intermediate stays live (halves spill traffic at large batch tiles).
    y1 = jnp.maximum(
        jnp.dot(x_ref[...], w1_ref[...], preferred_element_type=jnp.float32)
        + b1_ref[...], 0.0).astype(jnp.bfloat16)
    y2 = jnp.maximum(
        jnp.dot(y1, w2_ref[...], preferred_element_type=jnp.float32) + b2_ref[...], 0.0)

    # Fused mu / log_sigma head in f32 (tiny matmul; keeps log_prob accuracy tight).
    # wh is lane-padded so the split lands on a 128-lane boundary (no lane rotate).
    heads = jnp.dot(y2, wh_ref[...], preferred_element_type=jnp.float32) + bh_ref[...]
    mu = heads[:, :A]
    log_sigma = jnp.clip(heads[:, 128:128 + A], _LOG_SIGMA_MIN, _LOG_SIGMA_MAX)
    sigma = jnp.exp(log_sigma)

    # Reparameterized sample (dist.rsample()).
    eps = eps_ref[...]
    x_sample = mu + sigma * eps

    # Normal(mu, sigma).log_prob(x_sample): -(x_s-mu)^2/(2 sigma^2) == -0.5*eps^2
    # exactly, because x_sample = mu + sigma*eps is computed in the same precision.
    normal_lp = -0.5 * eps * eps - log_sigma - _HALF_LOG_2PI
    # tanh-squash correction: 2 ln2 - 2 x_s - 2 softplus(-2 x_s)
    corr = 2.0 * _LOG_2 - 2.0 * x_sample - 2.0 * _softplus(-2.0 * x_sample)

    # Merged output: action in lanes [0, A), log_prob in lane A (single HBM stream).
    out_ref[:, :A] = jnp.tanh(x_sample)
    out_ref[:, A:A + 1] = jnp.sum(normal_lp - corr, axis=1, keepdims=True)


def prepare_kernel_params(params):
    """Fuse + lane-align the mu/log_sigma heads; cast trunk weights to bf16 (once)."""
    A = params["wmu"].shape[1]
    assert A <= 128, "lane-aligned head packing assumes action_size <= 128"
    H2 = params["wmu"].shape[0]
    wh = jnp.zeros((H2, _HEAD_PAD), jnp.float32)
    wh = wh.at[:, :A].set(params["wmu"]).at[:, 128:128 + A].set(params["wls"])
    bh = jnp.zeros((1, _HEAD_PAD), jnp.float32)
    bh = bh.at[:, :A].set(params["bmu"]).at[:, 128:128 + A].set(params["bls"])
    return dict(
        w1=params["w1"].astype(jnp.bfloat16),
        b1=params["b1"],
        w2=params["w2"].astype(jnp.bfloat16),
        b2=params["b2"],
        wh=wh,   # f32: keeps mu / log_sigma (and hence log_prob) accuracy tight
        bh=bh,
    )


def pi_fc_forward(x, kparams, eps, *, block_b=1024):
    """Pi_FC forward (stochastic, with log_prob) as a batch-gridded Pallas kernel.

    block_b=1024 amortizes the ~0.35 us/step pipeline overhead; the per-step working
    set (bf16 x / y1, f32 y2 / heads, resident weights) is ~8 MiB, well inside every
    generation's scoped VMEM with vmem_limit_bytes raised explicitly below.
    """
    B, obs = x.shape
    H1 = kparams["w1"].shape[1]
    H2 = kparams["w2"].shape[1]
    HP = kparams["wh"].shape[1]          # lane-padded head width (256)
    A = eps.shape[1]

    # Host-side bf16 cast of x (halves x-tile DMA; MXU consumes bf16 anyway).
    x = x.astype(jnp.bfloat16)

    # Batch tile: multiple of 8 (sublane granularity), capped by block_b.
    tb = min(block_b, _round_up(B, 8))
    tb = max(8, (tb // 8) * 8)
    # Guarantee >= 2 grid steps whenever the batch allows it so the "parallel" batch
    # axis can be sharded across both v7x TensorCores (no-op on v5e/v6e).
    while tb > 8 and _round_up(B, tb) // tb < 2:
        tb = _round_up(tb // 2, 8)
    B_pad = _round_up(B, tb)
    if B_pad != B:
        x = jnp.pad(x, ((0, B_pad - B), (0, 0)))
        eps = jnp.pad(eps, ((0, B_pad - B), (0, 0)))

    def batch_spec(cols):
        return pl.BlockSpec((tb, cols), lambda i: (i, 0))

    def resident_spec(shape):
        # Constant block index: DMA'd once, stays resident across grid steps.
        return pl.BlockSpec(shape, lambda i: (0, 0))

    out = pl.pallas_call(
        _pi_fc_kernel,
        grid=(B_pad // tb,),
        in_specs=[
            batch_spec(obs),            # x tile (bf16)
            resident_spec((obs, H1)),   # w1 (bf16)
            resident_spec((1, H1)),     # b1
            resident_spec((H1, H2)),    # w2 (bf16)
            resident_spec((1, H2)),     # b2
            resident_spec((H2, HP)),    # lane-aligned [wmu | pad | wls | pad] (f32)
            resident_spec((1, HP)),     # lane-aligned [bmu | pad | bls | pad]
            batch_spec(A),              # eps tile (f32)
        ],
        out_specs=batch_spec(A + 1),    # merged [action | log_prob] tile
        out_shape=jax.ShapeDtypeStruct((B_pad, A + 1), jnp.float32),
        compiler_params=pltpu.CompilerParams(
            dimension_semantics=("parallel",),   # shard batch tiles across v7x TCs
            vmem_limit_bytes=48 * 1024 * 1024,   # headroom for block_b sweeps, < v7x 64 MiB
        ),
    )(x, kparams["w1"], kparams["b1"], kparams["w2"], kparams["b2"],
      kparams["wh"], kparams["bh"], eps)

    return out[:B, :A], out[:B, A]


def _init_linear(key, fan_in, fan_out):
    # PyTorch nn.Linear default init: U(-1/sqrt(fan_in), 1/sqrt(fan_in)); weight kept
    # pre-transposed to [in, out].
    kw, kb = jax.random.split(key)
    bound = 1.0 / np.sqrt(fan_in)
    w = jax.random.uniform(kw, (fan_in, fan_out), jnp.float32, -bound, bound)
    b = jax.random.uniform(kb, (1, fan_out), jnp.float32, -bound, bound)
    return w, b


def init_pi_fc_params(key, obs_size, action_size):
    k1, k2, k3, k4 = jax.random.split(key, 4)
    w1, b1 = _init_linear(k1, obs_size, 384)
    w2, b2 = _init_linear(k2, 384, 512)
    wmu, bmu = _init_linear(k3, 512, action_size)
    wls, bls = _init_linear(k4, 512, action_size)
    return dict(w1=w1, b1=b1, w2=w2, b2=b2, wmu=wmu, bmu=bmu, wls=wls, bls=bls)


def pi_fc_reference(x, p, eps):
    # Pure-JAX f32 reference mirroring the PyTorch forward
    # (not_random=False, use_logprob=True).
    y1 = jax.nn.relu(x @ p["w1"] + p["b1"])
    y2 = jax.nn.relu(y1 @ p["w2"] + p["b2"])
    mu = y2 @ p["wmu"] + p["bmu"]
    log_sigma = jnp.clip(y2 @ p["wls"] + p["bls"], _LOG_SIGMA_MIN, _LOG_SIGMA_MAX)
    sigma = jnp.exp(log_sigma)
    x_s = mu + sigma * eps
    lp = (-((x_s - mu) ** 2) / (2.0 * sigma ** 2) - log_sigma - _HALF_LOG_2PI).sum(1)
    lp = lp - (2.0 * _LOG_2 - 2.0 * x_s - 2.0 * jax.nn.softplus(-2.0 * x_s)).sum(1)
    return jnp.tanh(x_s), lp


def _check(action, log_prob, ref_action, ref_log_prob):
    # Trunk weights / activations and x are bf16 inside the kernel (head stays f32),
    # so compare against the f32 reference with moderately loose tolerances.
    np.testing.assert_allclose(np.asarray(action), np.asarray(ref_action),
                               rtol=1e-2, atol=2e-2)
    np.testing.assert_allclose(np.asarray(log_prob), np.asarray(ref_log_prob),
                               rtol=2e-2, atol=1e-1)


if __name__ == "__main__":
    obs_size, action_size, batch = 32, 8, 8

    key = jax.random.PRNGKey(0)
    k_params, k_x, k_eps = jax.random.split(key, 3)

    params = init_pi_fc_params(k_params, obs_size, action_size)
    kparams = prepare_kernel_params(params)

    # Check 1: tiny batch (single grid step).
    x = jax.random.normal(k_x, (batch, obs_size), jnp.float32)
    eps = jax.random.normal(k_eps, (batch, action_size), jnp.float32)
    action, log_prob = pi_fc_forward(x, kparams, eps)
    jax.block_until_ready((action, log_prob))
    _check(action, log_prob, *pi_fc_reference(x, params, eps))

    # Check 2: multiple tiles + batch padding (272 -> 384 with block_b=128, 3 steps).
    k_x2, k_eps2 = jax.random.split(jax.random.PRNGKey(1))
    batch2 = 272
    x2 = jax.random.normal(k_x2, (batch2, obs_size), jnp.float32)
    eps2 = jax.random.normal(k_eps2, (batch2, action_size), jnp.float32)
    action2, log_prob2 = pi_fc_forward(x2, kparams, eps2, block_b=128)
    jax.block_until_ready((action2, log_prob2))
    _check(action2, log_prob2, *pi_fc_reference(x2, params, eps2))

    # Check 3: default block_b with a batch that would otherwise be a single tile
    # (exercises the tb-halving path that guarantees >=2 grid steps for v7x).
    k_x3, k_eps3 = jax.random.split(jax.random.PRNGKey(2))
    batch3 = 256
    x3 = jax.random.normal(k_x3, (batch3, obs_size), jnp.float32)
    eps3 = jax.random.normal(k_eps3, (batch3, action_size), jnp.float32)
    action3, log_prob3 = pi_fc_forward(x3, kparams, eps3)
    jax.block_until_ready((action3, log_prob3))
    _check(action3, log_prob3, *pi_fc_reference(x3, params, eps3))

    print("KERNEL_OK")
</pallas_src>

<mosaic_0001>
module attributes {stable_mosaic.version = 11 : i64} {
  func.func @_pi_fc_kernel(%arg0: i32, %arg1: memref<8x32xbf16, #tpu.memory_space<vmem>>, %arg2: memref<32x384xbf16, #tpu.memory_space<vmem>>, %arg3: memref<1x384xf32, #tpu.memory_space<vmem>>, %arg4: memref<384x512xbf16, #tpu.memory_space<vmem>>, %arg5: memref<1x512xf32, #tpu.memory_space<vmem>>, %arg6: memref<512x256xf32, #tpu.memory_space<vmem>>, %arg7: memref<1x256xf32, #tpu.memory_space<vmem>>, %arg8: memref<8x8xf32, #tpu.memory_space<vmem>>, %arg9: memref<8x9xf32, #tpu.memory_space<vmem>>) attributes {dimension_semantics = [#tpu.dimension_semantics<parallel>], iteration_bounds = array<i64: 1>, scalar_prefetch = 0 : i64, scratch_operands = 0 : i64, tpu.core_type = #tpu.core_type<tc>, window_params = [{transform_indices = @transform_0, window_bounds = array<i64: 8, 32>}, {pipeline_mode = #tpu.pipeline_mode<synchronous>, transform_indices = @transform_1, window_bounds = array<i64: 32, 384>}, {pipeline_mode = #tpu.pipeline_mode<synchronous>, transform_indices = @transform_2, window_bounds = array<i64: 1, 384>}, {pipeline_mode = #tpu.pipeline_mode<synchronous>, transform_indices = @transform_3, window_bounds = array<i64: 384, 512>}, {pipeline_mode = #tpu.pipeline_mode<synchronous>, transform_indices = @transform_4, window_bounds = array<i64: 1, 512>}, {pipeline_mode = #tpu.pipeline_mode<synchronous>, transform_indices = @transform_5, window_bounds = array<i64: 512, 256>}, {pipeline_mode = #tpu.pipeline_mode<synchronous>, transform_indices = @transform_6, window_bounds = array<i64: 1, 256>}, {transform_indices = @transform_7, window_bounds = array<i64: 8, 8>}, {transform_indices = @transform_8, window_bounds = array<i64: 8, 9>}]} {
    %c0 = arith.constant 0 : index
    %c0_0 = arith.constant 0 : index
    %0 = vector.load %arg1[%c0, %c0_0] : memref<8x32xbf16, #tpu.memory_space<vmem>>, vector<8x32xbf16>
    %c0_1 = arith.constant 0 : index
    %c0_2 = arith.constant 0 : index
    %1 = vector.load %arg2[%c0_1, %c0_2] : memref<32x384xbf16, #tpu.memory_space<vmem>>, vector<32x384xbf16>
    %cst = arith.constant dense<0.000000e+00> : vector<8x384xf32>
    %2 = tpu.matmul %0, %1, %cst {dimension_numbers = #tpu.dot_dimension_numbers<[1], [0], [0], [1], [0, 0, 1, 1], [], []>} : vector<8x32xbf16>, vector<32x384xbf16>, vector<8x384xf32> -> vector<8x384xf32>
    %c0_3 = arith.constant 0 : index
    %c0_4 = arith.constant 0 : index
    %3 = vector.load %arg3[%c0_3, %c0_4] : memref<1x384xf32, #tpu.memory_space<vmem>>, vector<1x384xf32>
    %4 = vector.broadcast %3 : vector<1x384xf32> to vector<8x384xf32>
    %5 = arith.addf %2, %4 : vector<8x384xf32>
    %cst_5 = arith.constant 0.000000e+00 : f32
    %6 = vector.broadcast %cst_5 : f32 to vector<8x384xf32>
    %7 = arith.maximumf %5, %6 : vector<8x384xf32>
    %8 = arith.truncf %7 : vector<8x384xf32> to vector<8x384xbf16>
    %c0_6 = arith.constant 0 : index
    %c0_7 = arith.constant 0 : index
    %9 = vector.load %arg4[%c0_6, %c0_7] : memref<384x512xbf16, #tpu.memory_space<vmem>>, vector<384x512xbf16>
    %cst_8 = arith.constant dense<0.000000e+00> : vector<8x512xf32>
    %10 = tpu.matmul %8, %9, %cst_8 {dimension_numbers = #tpu.dot_dimension_numbers<[1], [0], [0], [1], [0, 0, 1, 1], [], []>} : vector<8x384xbf16>, vector<384x512xbf16>, vector<8x512xf32> -> vector<8x512xf32>
    %c0_9 = arith.constant 0 : index
    %c0_10 = arith.constant 0 : index
    %11 = vector.load %arg5[%c0_9, %c0_10] : memref<1x512xf32, #tpu.memory_space<vmem>>, vector<1x512xf32>
    %12 = vector.broadcast %11 : vector<1x512xf32> to vector<8x512xf32>
    %13 = arith.addf %10, %12 : vector<8x512xf32>
    %cst_11 = arith.constant 0.000000e+00 : f32
    %14 = vector.broadcast %cst_11 : f32 to vector<8x512xf32>
    %15 = arith.maximumf %13, %14 : vector<8x512xf32>
    %c0_12 = arith.constant 0 : index
    %c0_13 = arith.constant 0 : index
    %16 = vector.load %arg6[%c0_12, %c0_13] : memref<512x256xf32, #tpu.memory_space<vmem>>, vector<512x256xf32>
    %cst_14 = arith.constant dense<0.000000e+00> : vector<8x256xf32>
    %17 = tpu.matmul %15, %16, %cst_14 {dimension_numbers = #tpu.dot_dimension_numbers<[1], [0], [0], [1], [0, 0, 1, 1], [], []>} : vector<8x512xf32>, vector<512x256xf32>, vector<8x256xf32> -> vector<8x256xf32>
    %c0_15 = arith.constant 0 : index
    %c0_16 = arith.constant 0 : index
    %18 = vector.load %arg7[%c0_15, %c0_16] : memref<1x256xf32, #tpu.memory_space<vmem>>, vector<1x256xf32>
    %19 = vector.broadcast %18 : vector<1x256xf32> to vector<8x256xf32>
    %20 = arith.addf %17, %19 : vector<8x256xf32>
    %21 = vector.extract_strided_slice %20 {offsets = [0, 0], sizes = [8, 8], strides = [1, 1]} : vector<8x256xf32> to vector<8x8xf32>
    %22 = vector.extract_strided_slice %20 {offsets = [0, 128], sizes = [8, 8], strides = [1, 1]} : vector<8x256xf32> to vector<8x8xf32>
    %cst_17 = arith.constant -2.000000e+01 : f32
    %cst_18 = arith.constant 2.000000e+00 : f32
    %23 = vector.broadcast %cst_17 : f32 to vector<8x8xf32>
    %24 = arith.maximumf %23, %22 : vector<8x8xf32>
    %25 = vector.broadcast %cst_18 : f32 to vector<8x8xf32>
    %26 = arith.minimumf %25, %24 : vector<8x8xf32>
    %27 = math.exp %26 : vector<8x8xf32>
    %c0_19 = arith.constant 0 : index
    %c0_20 = arith.constant 0 : index
    %28 = vector.load %arg8[%c0_19, %c0_20] : memref<8x8xf32, #tpu.memory_space<vmem>>, vector<8x8xf32>
    %29 = arith.mulf %27, %28 : vector<8x8xf32>
    %30 = arith.addf %21, %29 : vector<8x8xf32>
    %cst_21 = arith.constant -5.000000e-01 : f32
    %31 = vector.broadcast %cst_21 : f32 to vector<8x8xf32>
    %32 = arith.mulf %31, %28 : vector<8x8xf32>
    %33 = arith.mulf %32, %28 : vector<8x8xf32>
    %34 = arith.subf %33, %26 : vector<8x8xf32>
    %cst_22 = arith.constant 0.918938517 : f32
    %35 = vector.broadcast %cst_22 : f32 to vector<8x8xf32>
    %36 = arith.subf %34, %35 : vector<8x8xf32>
    %cst_23 = arith.constant 2.000000e+00 : f32
    %37 = vector.broadcast %cst_23 : f32 to vector<8x8xf32>
    %38 = arith.mulf %37, %30 : vector<8x8xf32>
    %cst_24 = arith.constant 1.38629436 : f32
    %39 = vector.broadcast %cst_24 : f32 to vector<8x8xf32>
    %40 = arith.subf %39, %38 : vector<8x8xf32>
    %cst_25 = arith.constant -2.000000e+00 : f32
    %41 = vector.broadcast %cst_25 : f32 to vector<8x8xf32>
    %42 = arith.mulf %41, %30 : vector<8x8xf32>
    %cst_26 = arith.constant 0.000000e+00 : f32
    %43 = vector.broadcast %cst_26 : f32 to vector<8x8xf32>
    %44 = arith.maximumf %42, %43 : vector<8x8xf32>
    %45 = math.absf %42 : vector<8x8xf32>
    %cst_27 = arith.constant 0.000000e+00 : f32
    %46 = vector.broadcast %cst_27 : f32 to vector<8x8xf32>
    %47 = arith.subf %46, %45 : vector<8x8xf32>
    %48 = math.exp %47 : vector<8x8xf32>
    %49 = math.log1p %48 : vector<8x8xf32>
    %50 = arith.addf %44, %49 : vector<8x8xf32>
    %cst_28 = arith.constant 2.000000e+00 : f32
    %51 = vector.broadcast %cst_28 : f32 to vector<8x8xf32>
    %52 = arith.mulf %51, %50 : vector<8x8xf32>
    %53 = arith.subf %40, %52 : vector<8x8xf32>
    %54 = math.tanh %30 : vector<8x8xf32>
    %c0_29 = arith.constant 0 : index
    %c0_30 = arith.constant 0 : index
    %55 = vector.load %arg9[%c0_29, %c0_30] : memref<8x9xf32, #tpu.memory_space<vmem>>, vector<8x8xf32>
    tpu.vector_store %arg9[%c0_29, %c0_30], %54 {strides = array<i32>} : memref<8x9xf32, #tpu.memory_space<vmem>>, vector<8x8xf32>,
    %56 = arith.subf %36, %53 : vector<8x8xf32>
    %cst_31 = arith.constant dense<0.000000e+00> : vector<8xf32>
    %57 = vector.multi_reduction <add>, %56, %cst_31 [1] : vector<8x8xf32> to vector<8xf32>
    %58 = vector.shape_cast %57 : vector<8xf32> to vector<8x1xf32>
    %c0_32 = arith.constant 0 : index
    %c8 = arith.constant 8 : index
    %59 = vector.load %arg9[%c0_32, %c8] : memref<8x9xf32, #tpu.memory_space<vmem>>, vector<8x1xf32>
    tpu.vector_store %arg9[%c0_32, %c8], %58 {strides = array<i32>} : memref<8x9xf32, #tpu.memory_space<vmem>>, vector<8x1xf32>,
    return
  }
  func.func @transform_0(%arg0: i32) -> (i32, i32) {
    %c0_i32 = arith.constant 0 : i32
    %c0_i32_0 = arith.constant 0 : i32
    return %arg0, %c0_i32 : i32, i32
  }
  func.func @transform_1(%arg0: i32) -> (i32, i32) {
    %c0_i32 = arith.constant 0 : i32
    %c0_i32_0 = arith.constant 0 : i32
    %c0_i32_1 = arith.constant 0 : i32
    return %c0_i32, %c0_i32_0 : i32, i32
  }
  func.func @transform_2(%arg0: i32) -> (i32, i32) {
    %c0_i32 = arith.constant 0 : i32
    %c0_i32_0 = arith.constant 0 : i32
    %c0_i32_1 = arith.constant 0 : i32
    return %c0_i32, %c0_i32_0 : i32, i32
  }
  func.func @transform_3(%arg0: i32) -> (i32, i32) {
    %c0_i32 = arith.constant 0 : i32
    %c0_i32_0 = arith.constant 0 : i32
    %c0_i32_1 = arith.constant 0 : i32
    return %c0_i32, %c0_i32_0 : i32, i32
  }
  func.func @transform_4(%arg0: i32) -> (i32, i32) {
    %c0_i32 = arith.constant 0 : i32
    %c0_i32_0 = arith.constant 0 : i32
    %c0_i32_1 = arith.constant 0 : i32
    return %c0_i32, %c0_i32_0 : i32, i32
  }
  func.func @transform_5(%arg0: i32) -> (i32, i32) {
    %c0_i32 = arith.constant 0 : i32
    %c0_i32_0 = arith.constant 0 : i32
    %c0_i32_1 = arith.constant 0 : i32
    return %c0_i32, %c0_i32_0 : i32, i32
  }
  func.func @transform_6(%arg0: i32) -> (i32, i32) {
    %c0_i32 = arith.constant 0 : i32
    %c0_i32_0 = arith.constant 0 : i32
    %c0_i32_1 = arith.constant 0 : i32
    return %c0_i32, %c0_i32_0 : i32, i32
  }
  func.func @transform_7(%arg0: i32) -> (i32, i32) {
    %c0_i32 = arith.constant 0 : i32
    %c0_i32_0 = arith.constant 0 : i32
    return %arg0, %c0_i32 : i32, i32
  }
  func.func @transform_8(%arg0: i32) -> (i32, i32) {
    %c0_i32 = arith.constant 0 : i32
    %c0_i32_0 = arith.constant 0 : i32
    return %arg0, %c0_i32 : i32, i32
  }
}

</mosaic_0001>

<bundles_post_ra>
// kernel: tpu_custom_call.1
= control target key start
LH: loop header
LB: loop body
LE: loop exit
PB: predicated region body
PF: predicated region fallthrough
CT: control target
= control target key end

     0   :  { %13 = vsyncpa [#allocation3], 0  ;;  %s2042_s0 = inlined_call_operand.hbm [shape: bf16[8,32], index: 0, kind: input, shape index: {}]   ;;  %s2043_s1 = inlined_call_operand.hbm [shape: bf16[32,384], index: 1, kind: input, shape index: {}]   ;;  %s2044_s2 = inlined_call_operand.vmem [shape: f32[1,384], index: 2, kind: input, shape index: {}]   ;;  %s2045_s3 = inlined_call_operand.hbm [shape: bf16[384,512], index: 3, kind: input, shape index: {}]   ;;  %s2046_s4 = inlined_call_operand.vmem [shape: f32[1,512], index: 4, kind: input, shape index: {}]   ;;  %s2047_s5 = inlined_call_operand.hbm [shape: f32[512,256], index: 5, kind: input, shape index: {}]   ;;  %s2048_s6 = inlined_call_operand.vmem [shape: f32[1,256], index: 6, kind: input, shape index: {}]   ;;  %s2049_s7 = inlined_call_operand.vmem [shape: f32[8,8], index: 7, kind: input, shape index: {}]   ;;  %s2050_s8 = inlined_call_operand.hbm [shape: f32[8,9], index: 8, kind: output, shape index: {}]  }
   0x1   :  { %14 = vsyncpa [#allocation6], 0 }
   0x2   :  { %15 = vsyncpa [#allocation9], 0 }
   0x3   :  { %16 = vsyncpa [#allocation4], 0  ;;  %s1888_s27 = smov [#allocation5]   ;;  %s1770_s9 = scalar_lea.hbm %s2043_s1, 768 }
   0x4   :  { %s32_s28 = sshll.u32 %s1888_s27, 4  ;;  %p1771_p0 = scmp.ne.s32.totalorder %s2043_s1, %s1770_s9  ;;  %s33_s28 = int_to_ptr.vmem [resolvable:$true] %s32_s28 }
   0x5   :  { %p1774_p1 = scmp.lt.u32.totalorder %s1770_s9, %s2043_s1 }
   0x7   :  { %p1776_p2 = pnand %p1774_p1, %p1771_p0 }
   0x9   :  { %1779 = shalt.err (!%p1776_p2)
}
   0xa   :  { %s1780_s14 = scalar_lea.vmem %s33_s28, 768  ;;  %p1785_p4 = scmp.lt.s32.totalorder %s33_s28, %s33_s28 }
   0xb   :  { %p1781_p3 = scmp.ne.s32.totalorder %s33_s28, %s1780_s14  ;;  %p1786_p5 = scmp.lt.s32.totalorder %s1780_s14, %s1780_s14 }
   0xd   :  { %p1787_p6 = por %p1786_p5, %p1785_p4 }
   0xf   :  { %p1788_p7 = pnand %p1787_p6, %p1781_p3 }
  0x11   :  { %1791 = shalt.err (!%p1788_p7)
}
  0x12   :  { %s1889_s15 = smov 192   ;;  %s1890_s16 = smov 12  }
  0x13   :  { %38 = dma.hbm_to_vmem [thread:$0]  %s2043_s1, 768, %s33_s28, [#allocation6], %s1889_s15, %s1889_s15, %s1890_s16  }
  0x14   :  { %s1891_s19 = smov [#allocation2]   ;;  %s1892_s21 = smov [#allocation7]  }
  0x15   :  { %s23_s20 = sshll.u32 %s1891_s19, 4  ;;  %s46_s22 = sshll.u32 %s1892_s21, 4  ;;  %s24_s20 = int_to_ptr.vmem [resolvable:$true] %s23_s20  ;;  %s47_s22 = int_to_ptr.vmem [resolvable:$true] %s46_s22 }
  0x16   :  { %s1792_s25 = scalar_lea.hbm %s2042_s0, 64 }
  0x17   :  { %p1793_p8 = scmp.ne.s32.totalorder %s2042_s0, %s1792_s25  ;;  %p1796_p9 = scmp.lt.u32.totalorder %s1792_s25, %s2042_s0 }
  0x19   :  { %p1798_p10 = pnand %p1796_p9, %p1793_p8 }
  0x1b   :  { %1801 = shalt.err (!%p1798_p10)
}
  0x1c   :  { %s1802_s1 = scalar_lea.vmem %s24_s20, 64  ;;  %p1807_p12 = scmp.lt.s32.totalorder %s24_s20, %s24_s20 }
  0x1d   :  { %p1803_p11 = scmp.ne.s32.totalorder %s24_s20, %s1802_s1  ;;  %p1808_p13 = scmp.lt.s32.totalorder %s1802_s1, %s1802_s1 }
  0x1f   :  { %p1809_p0 = por %p1808_p13, %p1807_p12 }
  0x21   :  { %p1810_p1 = pnand %p1809_p0, %p1803_p11 }
  0x23   :  { %1813 = shalt.err (!%p1810_p1)
}
  0x24   :  { %26 = dma.hbm_to_vmem [thread:$0]  %s2042_s0, 64, %s24_s20, [#allocation3]  }
  0x25   :  { %s1814_s12 = scalar_lea.hbm %s2045_s3, 12288 }
  0x26   :  { %p1815_p2 = scmp.ne.s32.totalorder %s2045_s3, %s1814_s12  ;;  %p1818_p3 = scmp.lt.u32.totalorder %s1814_s12, %s2045_s3 }
  0x28   :  { %p1820_p4 = pnand %p1818_p3, %p1815_p2 }
  0x2a   :  { %1823 = shalt.err (!%p1820_p4)
}
  0x2b   :  { %s1824_s17 = scalar_lea.vmem %s47_s22, 12288  ;;  %p1829_p6 = scmp.lt.s32.totalorder %s47_s22, %s47_s22 }
  0x2c   :  { %p1825_p5 = scmp.ne.s32.totalorder %s47_s22, %s1824_s17  ;;  %p1830_p7 = scmp.lt.s32.totalorder %s1824_s17, %s1824_s17 }
  0x2e   :  { %p1831_p8 = por %p1830_p7, %p1829_p6 }
  0x30   :  { %p1832_p9 = pnand %p1831_p8, %p1825_p5 }
  0x32   :  { %1835 = shalt.err (!%p1832_p9)
}
  0x33   :  { %s1893_s0 = smov 256   ;;  %s1894_s18 = smov 16  }
  0x34   :  { %52 = dma.hbm_to_vmem [thread:$0]  %s2045_s3, 12288, %s47_s22, [#allocation6], %s1893_s0, %s1893_s0, %s1894_s18  }
  0x35   :  { %s1895_s21 = smov [#allocation8]   ;;  %s1836_s26 = scalar_lea.hbm %s2047_s5, 16384 }
  0x36   :  { %s60_s23 = sshll.u32 %s1895_s21, 4  ;;  %p1837_p10 = scmp.ne.s32.totalorder %s2047_s5, %s1836_s26  ;;  %s61_s23 = int_to_ptr.vmem [resolvable:$true] %s60_s23 }
  0x37   :  { %p1840_p11 = scmp.lt.u32.totalorder %s1836_s26, %s2047_s5 }
  0x39   :  { %p1842_p12 = pnand %p1840_p11, %p1837_p10 }
  0x3b   :  { %1845 = shalt.err (!%p1842_p12)
}
  0x3c   :  { %s1846_s28 = scalar_lea.vmem %s61_s23, 16384  ;;  %p1851_p0 = scmp.lt.s32.totalorder %s61_s23, %s61_s23 }
  0x3d   :  { %p1847_p13 = scmp.ne.s32.totalorder %s61_s23, %s1846_s28  ;;  %p1852_p1 = scmp.lt.s32.totalorder %s1846_s28, %s1846_s28 }
  0x3f   :  { %p1853_p2 = por %p1852_p1, %p1851_p0 }
  0x41   :  { %p1854_p3 = pnand %p1853_p2, %p1847_p13 }
  0x43   :  { %1857 = shalt.err (!%p1854_p3)
}
  0x44   :  { %66 = dma.hbm_to_vmem [thread:$0]  %s2047_s5, 16384, %s61_s23, [#allocation9], %s1893_s0, %s1893_s0, %s1894_s18  }
  0x45   :  { %1880 = dma.done.wait [#allocation3], 64  }
  0x46   :  { %1881 = vsyncadd [#allocation3], 4294967232 }
  0x47   :  { %1882 = dma.done.wait [#allocation6], 13056  }
  0x48   :  { %1883 = vsyncadd [#allocation6], 4294954240 }
  0x49   :  { %1884 = dma.done.wait [#allocation9], 16384  }
  0x4a   :  { %1885 = vsyncadd [#allocation9], 4294950912  ;;  %v1896_v0 = vmov 0   ;;  %v1897_v1 = vmov 0.0   ;;  %vm1898_vm0 = vmmov 0   ;;  %vm142_vm1 = vcmask 261120  }
  0x4b   :  { %178 = vmatprep.mubr.bf16.mxu0 %v1896_v0  ;;  %1446 = vmatprep.subr.bf16.mxu1 %v1897_v1  ;;  %v1610_v2 = vld [vmem:[#allocation5 + $0x4] ss:$12 sps:$4 sm:$0xff]   ;;  %v1612_v3 = vld [vmem:[#allocation5] ss:$12 sps:$4 sm:$0xff]   ;;  %v1613_v4 = vld [vmem:[#allocation5 + $0x1c] ss:$12 sps:$4 sm:$0xff]  }
  0x4c   :  { %1450 = vmatprep.mubr.msk.bf16.mxu1 %vm1898_vm0, %v1897_v1  ;;  %146 = vmatprep.subr.bf16.mxu0 %v1610_v2  ;;  %v1615_v5 = vld [vmem:[#allocation5 + $0x18] ss:$12 sps:$4 sm:$0xff]   ;;  %v1616_v6 = vld [vmem:[#allocation5 + $0x8] ss:$12 sps:$4 sm:$0xff]   ;;  %v84_v7 = vld [vmem:[#allocation2] sm:$0xf] }
  0x4d   :  { %147 = vmatpush1.bf16.msra.mxu0 %v1612_v3  ;;  %1447 = vmatpush3.bf16.msra.mxu1 %v1616_v6  ;;  %v1617_v8 = vld [vmem:[#allocation5 + $0x20] ss:$12 sps:$4 sm:$0xff]   ;;  %v1620_v9 = vld [vmem:[#allocation7 + $0x4] ss:$16 sps:$4 sm:$0xff]   ;;  %v1621_v13 = vld [vmem:[#allocation7 + $0x8] ss:$16 sps:$4 sm:$0xff]  }
  0x4e   :  { %148 = vmatprep.subr.bf16.mxu0 %v1613_v4  ;;  %1448 = vmatprep.subr.bf16.mxu1 %v1897_v1  ;;  %v1618_v10 = vld [vmem:[#allocation7] ss:$16 sps:$4 sm:$0xff]   ;;  %v1623_v11 = vld [vmem:[#allocation7 + $0xc] ss:$16 sps:$4 sm:$0xff]   ;;  %v1626_v12 = vld [vmem:[#allocation7 + $0x24] ss:$16 sps:$4 sm:$0xff]  }
  0x4f   :  { %v1629_v14 = vld [vmem:[#allocation7 + $0x2c] ss:$16 sps:$4 sm:$0xff]   ;;  %v1624_v15 = vld [vmem:[#allocation7 + $0x20] ss:$16 sps:$4 sm:$0xff]   ;;  %v1632_v16 = vld [vmem:[#allocation7 + $0x44] ss:$16 sps:$4 sm:$0xff]  }
  0x50   :  { %v1627_v17 = vld [vmem:[#allocation7 + $0x28] ss:$16 sps:$4 sm:$0xff]   ;;  %v1635_v18 = vld [vmem:[#allocation7 + $0x4c] ss:$16 sps:$4 sm:$0xff]   ;;  %v1630_v19 = vld [vmem:[#allocation7 + $0x40] ss:$16 sps:$4 sm:$0xff]  }
  0x51   :  { %149 = vmatpush1.bf16.msra.mxu0 %v1615_v5  ;;  %1449 = vmatpush3.bf16.msra.mxu1 %v1617_v8  ;;  %v1638_v20 = vld [vmem:[#allocation7 + $0x64] ss:$16 sps:$4 sm:$0xff]   ;;  %v1633_v21 = vld [vmem:[#allocation7 + $0x48] ss:$16 sps:$4 sm:$0xff]   ;;  %v1641_v22 = vld [vmem:[#allocation7 + $0x6c] ss:$16 sps:$4 sm:$0xff]  }
  0x52   :  { %831 = vmatprep.subr.bf16.mxu0 %v1620_v9  ;;  %913 = vmatprep.subr.bf16.mxu1 %v1623_v11  ;;  %v1636_v23 = vld [vmem:[#allocation7 + $0x60] ss:$16 sps:$4 sm:$0xff]   ;;  %v1644_v24 = vld [vmem:[#allocation7 + $0x84] ss:$16 sps:$4 sm:$0xff]   ;;  %v1639_v25 = vld [vmem:[#allocation7 + $0x68] ss:$16 sps:$4 sm:$0xff]  }
  0x53   :  { %v1647_v26 = vld [vmem:[#allocation7 + $0x8c] ss:$16 sps:$4 sm:$0xff]   ;;  %v1642_v27 = vld [vmem:[#allocation7 + $0x80] ss:$16 sps:$4 sm:$0xff]   ;;  %v1650_v28 = vld [vmem:[#allocation7 + $0xa4] ss:$16 sps:$4 sm:$0xff]  }
  0x54   :  { %1344 = vmatmul.mubr.msk.bf16.vlgmr.msra.gmra.mrb[0].mxu0 %vm142_vm1, %v84_v7  ;;  %1451 = vmatmul.mubr.msk.bf16.vlgmr.msra.gmra.mrb[0].mxu1 %vm142_vm1, %v84_v7  ;;  %v1645_v29 = vld [vmem:[#allocation7 + $0x88] ss:$16 sps:$4 sm:$0xff]   ;;  %v1653_v30 = vld [vmem:[#allocation7 + $0xac] ss:$16 sps:$4 sm:$0xff]   ;;  %v1648_v31 = vld [vmem:[#allocation7 + $0xa0] ss:$16 sps:$4 sm:$0xff]  }
  0x55   :  { %832 = vmatpush1.bf16.msra.mxu0 %v1618_v10  ;;  %914 = vmatpush1.bf16.msra.mxu1 %v1621_v13  ;;  %v1656_v32 = vld [vmem:[#allocation7 + $0xc4] ss:$16 sps:$4 sm:$0xff]   ;;  %v1651_v33 = vld [vmem:[#allocation7 + $0xa8] ss:$16 sps:$4 sm:$0xff]   ;;  %v1659_v34 = vld [vmem:[#allocation7 + $0xcc] ss:$16 sps:$4 sm:$0xff]  }
  0x56   :  { %833 = vmatprep.subr.bf16.mxu0 %v1626_v12  ;;  %915 = vmatprep.subr.bf16.mxu1 %v1629_v14  ;;  %v1654_v35 = vld [vmem:[#allocation7 + $0xc0] ss:$16 sps:$4 sm:$0xff]   ;;  %v1662_v36 = vld [vmem:[#allocation7 + $0xe4] ss:$16 sps:$4 sm:$0xff]   ;;  %v1657_v37 = vld [vmem:[#allocation7 + $0xc8] ss:$16 sps:$4 sm:$0xff]   ;;  %v95_v12 = vlaneseq }
  0x57   :  { %v1665_v38 = vld [vmem:[#allocation7 + $0xec] ss:$16 sps:$4 sm:$0xff]   ;;  %v1660_v39 = vld [vmem:[#allocation7 + $0xe0] ss:$16 sps:$4 sm:$0xff]   ;;  %v1668_v40 = vld [vmem:[#allocation7 + $0x104] ss:$16 sps:$4 sm:$0xff]  }
  0x58   :  { %v1663_v41 = vld [vmem:[#allocation7 + $0xe8] ss:$16 sps:$4 sm:$0xff]   ;;  %v1671_v42 = vld [vmem:[#allocation7 + $0x10c] ss:$16 sps:$4 sm:$0xff]   ;;  %v1666_v43 = vld [vmem:[#allocation7 + $0x100] ss:$16 sps:$4 sm:$0xff]  }
  0x59   :  { %834 = vmatpush1.bf16.msra.mxu0 %v1624_v15  ;;  %916 = vmatpush1.bf16.msra.mxu1 %v1627_v17  ;;  %v1669_v44 = vld [vmem:[#allocation7 + $0x108] ss:$16 sps:$4 sm:$0xff]   ;;  %v1674_v45 = vld [vmem:[#allocation7 + $0x124] ss:$16 sps:$4 sm:$0xff]   ;;  %v1672_v46 = vld [vmem:[#allocation7 + $0x120] ss:$16 sps:$4 sm:$0xff]  }
  0x5a   :  { %835 = vmatprep.subr.bf16.mxu0 %v1632_v16  ;;  %917 = vmatprep.subr.bf16.mxu1 %v1635_v18  ;;  %v1677_v47 = vld [vmem:[#allocation7 + $0x12c] ss:$16 sps:$4 sm:$0xff]   ;;  %v1680_v48 = vld [vmem:[#allocation7 + $0x144] ss:$16 sps:$4 sm:$0xff]   ;;  %v1675_v49 = vld [vmem:[#allocation7 + $0x128] ss:$16 sps:$4 sm:$0xff]  }
  0x5b   :  { %v1683_v50 = vld [vmem:[#allocation7 + $0x14c] ss:$16 sps:$4 sm:$0xff]   ;;  %v1678_v51 = vld [vmem:[#allocation7 + $0x140] ss:$16 sps:$4 sm:$0xff]   ;;  %v1686_v52 = vld [vmem:[#allocation7 + $0x164] ss:$16 sps:$4 sm:$0xff]  }
  0x5c   :  { %v1681_v53 = vld [vmem:[#allocation7 + $0x148] ss:$16 sps:$4 sm:$0xff]   ;;  %v1689_v54 = vld [vmem:[#allocation7 + $0x16c] ss:$16 sps:$4 sm:$0xff]   ;;  %v1684_v55 = vld [vmem:[#allocation7 + $0x160] ss:$16 sps:$4 sm:$0xff]  }
  0x5d   :  { %836 = vmatpush1.bf16.msra.mxu0 %v1630_v19  ;;  %918 = vmatpush1.bf16.msra.mxu1 %v1633_v21  ;;  %v1692_v56 = vld [vmem:[#allocation7 + $0x184] ss:$16 sps:$4 sm:$0xff]   ;;  %v1687_v57 = vld [vmem:[#allocation7 + $0x168] ss:$16 sps:$4 sm:$0xff]   ;;  %v1695_v58 = vld [vmem:[#allocation7 + $0x18c] ss:$16 sps:$4 sm:$0xff]  }
  0x5e   :  { %837 = vmatprep.subr.bf16.mxu0 %v1638_v20  ;;  %919 = vmatprep.subr.bf16.mxu1 %v1641_v22  ;;  %v1690_v59 = vld [vmem:[#allocation7 + $0x180] ss:$16 sps:$4 sm:$0xff]   ;;  %v1698_v60 = vld [vmem:[#allocation7 + $0x1a4] ss:$16 sps:$4 sm:$0xff]   ;;  %v1693_v61 = vld [vmem:[#allocation7 + $0x188] ss:$16 sps:$4 sm:$0xff]  }
  0x5f   :  { %v1701_v62 = vld [vmem:[#allocation7 + $0x1ac] ss:$16 sps:$4 sm:$0xff]   ;;  %v1696_v63 = vld [vmem:[#allocation7 + $0x1a0] ss:$16 sps:$4 sm:$0xff]   ;;  %v1699_v1 = vld [vmem:[#allocation7 + $0x1a8] ss:$16 sps:$4 sm:$0xff]  }
  0x60   :  { %v1704_v2 = vld [vmem:[#allocation7 + $0x1c4] ss:$16 sps:$4 sm:$0xff]   ;;  %v1707_v3 = vld [vmem:[#allocation7 + $0x1cc] ss:$16 sps:$4 sm:$0xff]   ;;  %v1702_v4 = vld [vmem:[#allocation7 + $0x1c0] ss:$16 sps:$4 sm:$0xff]  }
  0x61   :  { %838 = vmatpush1.bf16.msra.mxu0 %v1636_v23  ;;  %920 = vmatpush1.bf16.msra.mxu1 %v1639_v25  ;;  %v1705_v5 = vld [vmem:[#allocation7 + $0x1c8] ss:$16 sps:$4 sm:$0xff]   ;;  %v1710_v6 = vld [vmem:[#allocation7 + $0x1e4] ss:$16 sps:$4 sm:$0xff]   ;;  %v1713_v7 = vld [vmem:[#allocation7 + $0x1ec] ss:$16 sps:$4 sm:$0xff]  }
  0x62   :  { %839 = vmatprep.subr.bf16.mxu0 %v1644_v24  ;;  %921 = vmatprep.subr.bf16.mxu1 %v1647_v26  ;;  %v1708_v8 = vld [vmem:[#allocation7 + $0x1e0] ss:$16 sps:$4 sm:$0xff]   ;;  %v1711_v9 = vld [vmem:[#allocation7 + $0x1e8] ss:$16 sps:$4 sm:$0xff]   ;;  %v1716_v10 = vld [vmem:[#allocation7 + $0x204] ss:$16 sps:$4 sm:$0xff]  }
  0x63   :  { %v1719_v11 = vld [vmem:[#allocation7 + $0x20c] ss:$16 sps:$4 sm:$0xff]   ;;  %v1994_v13 = vshrl.u32 %v95_v12, 7  ;;  %v93_v15 = vld [vmem:[%s2044_s2] sm:$0x7]  ;;  %v1065_v12 = vld [vmem:[#allocation8 + $0x210] sm:$0xff] }
  0x64   :  { %vm1313_vm2 = vcmask 64512   ;;  %vm1319_vm4 = vcmask 72768  }
  0x65   :  { %840 = vmatpush1.bf16.msra.mxu0 %v1642_v27  ;;  %922 = vmatpush1.bf16.msra.mxu1 %v1645_v29  ;;  %v1997_v14 = vsub.s32 0, %v1994_v13  ;;  %v2003_v16 = vsub.s32 1, %v1994_v13 }
  0x66   :  { %841 = vmatprep.subr.bf16.mxu0 %v1650_v28  ;;  %923 = vmatprep.subr.bf16.mxu1 %v1653_v30 }
  0x67   :  { %v98_v17 = vrot.slane %v93_v15, %v1997_v14  ;;  %v102_v18 = vrot.slane %v93_v15, %v2003_v16 }
  0x69   :  { %842 = vmatpush1.bf16.msra.mxu0 %v1648_v31  ;;  %924 = vmatpush1.bf16.msra.mxu1 %v1651_v33  ;;  %v1717_v33 = vld [vmem:[#allocation7 + $0x208] ss:$16 sps:$4 sm:$0xff]  }
  0x6a   :  { %843 = vmatprep.subr.bf16.mxu0 %v1656_v32  ;;  %925 = vmatprep.subr.bf16.mxu1 %v1659_v34  ;;  %v1714_v32 = vld [vmem:[#allocation7 + $0x200] ss:$16 sps:$4 sm:$0xff]  }
  0x6d   :  { %844 = vmatpush1.bf16.msra.mxu0 %v1654_v35  ;;  %926 = vmatpush1.bf16.msra.mxu1 %v1657_v37  ;;  %v1722_v35 = vld [vmem:[#allocation7 + $0x224] ss:$16 sps:$4 sm:$0xff]   ;;  %v1720_v37 = vld [vmem:[#allocation7 + $0x220] ss:$16 sps:$4 sm:$0xff]  }
  0x6e   :  { %845 = vmatprep.subr.bf16.mxu0 %v1662_v36  ;;  %927 = vmatprep.subr.bf16.mxu1 %v1665_v38  ;;  %v1725_v36 = vld [vmem:[#allocation7 + $0x22c] ss:$16 sps:$4 sm:$0xff]   ;;  %v1723_v38 = vld [vmem:[#allocation7 + $0x228] ss:$16 sps:$4 sm:$0xff]  }
  0x71   :  { %846 = vmatpush1.bf16.msra.mxu0 %v1660_v39  ;;  %928 = vmatpush1.bf16.msra.mxu1 %v1663_v41  ;;  %v1728_v39 = vld [vmem:[#allocation7 + $0x244] ss:$16 sps:$4 sm:$0xff]   ;;  %v1726_v41 = vld [vmem:[#allocation7 + $0x240] ss:$16 sps:$4 sm:$0xff]  }
  0x72   :  { %847 = vmatprep.subr.bf16.mxu0 %v1668_v40  ;;  %929 = vmatprep.subr.bf16.mxu1 %v1671_v42  ;;  %v1731_v40 = vld [vmem:[#allocation7 + $0x24c] ss:$16 sps:$4 sm:$0xff]   ;;  %v1729_v42 = vld [vmem:[#allocation7 + $0x248] ss:$16 sps:$4 sm:$0xff]  }
  0x75   :  { %848 = vmatpush1.bf16.msra.mxu0 %v1666_v43  ;;  %930 = vmatpush1.bf16.msra.mxu1 %v1669_v44  ;;  %v1734_v43 = vld [vmem:[#allocation7 + $0x264] ss:$16 sps:$4 sm:$0xff]   ;;  %v1737_v44 = vld [vmem:[#allocation7 + $0x26c] ss:$16 sps:$4 sm:$0xff]  }
  0x76   :  { %849 = vmatprep.subr.bf16.mxu0 %v1674_v45  ;;  %931 = vmatprep.subr.bf16.mxu1 %v1677_v47  ;;  %v1732_v45 = vld [vmem:[#allocation7 + $0x260] ss:$16 sps:$4 sm:$0xff]   ;;  %v1740_v47 = vld [vmem:[#allocation7 + $0x284] ss:$16 sps:$4 sm:$0xff]  }
  0x79   :  { %850 = vmatpush1.bf16.msra.mxu0 %v1672_v46  ;;  %932 = vmatpush1.bf16.msra.mxu1 %v1675_v49  ;;  %v1735_v46 = vld [vmem:[#allocation7 + $0x268] ss:$16 sps:$4 sm:$0xff]   ;;  %v105_v49 = vsub.s32 2, %v1994_v13 }
  0x7a   :  { %851 = vmatprep.subr.bf16.mxu0 %v1680_v48  ;;  %933 = vmatprep.subr.bf16.mxu1 %v1683_v50  ;;  %v1743_v48 = vld [vmem:[#allocation7 + $0x28c] ss:$16 sps:$4 sm:$0xff]   ;;  %v1741_v50 = vld [vmem:[#allocation7 + $0x288] ss:$16 sps:$4 sm:$0xff]  }
  0x7d   :  { %852 = vmatpush1.bf16.msra.mxu0 %v1678_v51  ;;  %934 = vmatpush1.bf16.msra.mxu1 %v1681_v53  ;;  %v1746_v51 = vld [vmem:[#allocation7 + $0x2a4] ss:$16 sps:$4 sm:$0xff]   ;;  %v106_v53 = vrot.slane %v93_v15, %v105_v49  ;;  %v1004_v15 = vld [vmem:[#allocation8 + $0x28] sm:$0xff] }
  0x7e   :  { %853 = vmatprep.subr.bf16.mxu0 %v1686_v52  ;;  %935 = vmatprep.subr.bf16.mxu1 %v1689_v54  ;;  %v1749_v52 = vld [vmem:[#allocation7 + $0x2ac] ss:$16 sps:$4 sm:$0xff]   ;;  %v1744_v54 = vld [vmem:[#allocation7 + $0x2a0] ss:$16 sps:$4 sm:$0xff]  }
  0x81   :  { %854 = vmatpush1.bf16.msra.mxu0 %v1684_v55  ;;  %936 = vmatpush1.bf16.msra.mxu1 %v1687_v57  ;;  %v1747_v55 = vld [vmem:[#allocation7 + $0x2a8] ss:$16 sps:$4 sm:$0xff]   ;;  %v1755_v57 = vld [vmem:[#allocation7 + $0x2cc] ss:$16 sps:$4 sm:$0xff]  }
  0x82   :  { %855 = vmatprep.subr.bf16.mxu0 %v1692_v56  ;;  %937 = vmatprep.subr.bf16.mxu1 %v1695_v58  ;;  %v1752_v56 = vld [vmem:[#allocation7 + $0x2c4] ss:$16 sps:$4 sm:$0xff]  }
  0x85   :  { %856 = vmatpush1.bf16.msra.mxu0 %v1690_v59  ;;  %938 = vmatpush1.bf16.msra.mxu1 %v1693_v61  ;;  %v1750_v59 = vld [vmem:[#allocation7 + $0x2c0] ss:$16 sps:$4 sm:$0xff]   ;;  %v1758_v61 = vld [vmem:[#allocation7 + $0x2e4] ss:$16 sps:$4 sm:$0xff]  }
  0x86   :  { %857 = vmatprep.subr.bf16.mxu0 %v1698_v60  ;;  %939 = vmatprep.subr.bf16.mxu1 %v1701_v62  ;;  %v1753_v60 = vld [vmem:[#allocation7 + $0x2c8] ss:$16 sps:$4 sm:$0xff]   ;;  %v1761_v62 = vld [vmem:[#allocation7 + $0x2ec] ss:$16 sps:$4 sm:$0xff]  }
  0x89   :  { %858 = vmatpush1.bf16.msra.mxu0 %v1696_v63  ;;  %940 = vmatpush1.bf16.msra.mxu1 %v1699_v1  ;;  %v1000_v63 = vld [vmem:[#allocation8 + $0x8] sm:$0xff]  ;;  %v1002_v1 = vld [vmem:[#allocation8 + $0x18] sm:$0xff] }
  0x8a   :  { %859 = vmatprep.subr.bf16.mxu0 %v1704_v2  ;;  %941 = vmatprep.subr.bf16.mxu1 %v1707_v3  ;;  %v1064_v2 = vld [vmem:[#allocation8 + $0x208] sm:$0xff]  ;;  %v1066_v3 = vld [vmem:[#allocation8 + $0x218] sm:$0xff] }
  0x8d   :  { %860 = vmatpush1.bf16.msra.mxu0 %v1702_v4  ;;  %942 = vmatpush1.bf16.msra.mxu1 %v1705_v5  ;;  %v1756_v5 = vld [vmem:[#allocation7 + $0x2e0] ss:$16 sps:$4 sm:$0xff]  }
  0x8e   :  { %861 = vmatprep.subr.bf16.mxu0 %v1710_v6  ;;  %943 = vmatprep.subr.bf16.mxu1 %v1713_v7  ;;  %v1759_v6 = vld [vmem:[#allocation7 + $0x2e8] ss:$16 sps:$4 sm:$0xff]   ;;  %v999_v7 = vld [vmem:[#allocation8] sm:$0xff] }
  0x91   :  { %862 = vmatpush1.bf16.msra.mxu0 %v1708_v8  ;;  %944 = vmatpush1.bf16.msra.mxu1 %v1711_v9  ;;  %v1001_v8 = vld [vmem:[#allocation8 + $0x10] sm:$0xff]  ;;  %v1454_v9 = vpack.c.bf16 %v1002_v1, %v1000_v63  ;;  %v1079_v63 = vld [vmem:[#allocation8 + $0x280] sm:$0xff] }
  0x92   :  { %872 = vmatprep.subr.bf16.mxu0 %v1716_v10  ;;  %954 = vmatprep.subr.bf16.mxu1 %v1719_v11  ;;  %v1518_v10 = vpack.c.bf16 %v1066_v3, %v1064_v2  ;;  %v1063_v11 = vld [vmem:[#allocation8 + $0x200] sm:$0xff]  ;;  %v1081_v1 = vld [vmem:[#allocation8 + $0x290] sm:$0xff]  ;;  %v1020_v2 = vld [vmem:[#allocation8 + $0xa8] sm:$0xff] }
  0x93   :  { %v1022_v3 = vld [vmem:[#allocation8 + $0xb8] sm:$0xff] }
 0x127   :  { %v180_v19 = vpop.f32.mrb[0].mxu0  ;;  %v221_v24 = vpop.f32.mrb[0].mxu1 }
 0x128   :  { %v181_v20 = vadd.f32 %v180_v19, %v98_v17  ;;  %v182_v21 = vpop.f32.mrb[1].mxu0  ;;  %v1452_v27 = vpop.f32.mrb[1].mxu1  ;;  %v222_v58 = vadd.f32 %v221_v24, %v106_v53  ;;  %v1006_v17 = vld [vmem:[#allocation8 + $0x38] sm:$0xff]  ;;  %v1005_v24 = vld [vmem:[#allocation8 + $0x30] sm:$0xff]  ;;  %v1016_v53 = vld [vmem:[#allocation8 + $0x88] sm:$0xff] }
 0x129   :  { %v183_v22 = vadd.f32 %v182_v21, %v102_v18  ;;  %v184_v23 = vpop.f32.mrb[2].mxu0  ;;  %v224_v29 = vpop.f32.mrb[2].mxu1  ;;  %v1068_v18 = vld [vmem:[#allocation8 + $0x228] sm:$0xff]  ;;  %v1070_v19 = vld [vmem:[#allocation8 + $0x238] sm:$0xff]  ;;  %v1456_v21 = vpack.c.bf16 %v1001_v8, %v999_v7  ;;  %v1067_v27 = vld [vmem:[#allocation8 + $0x220] sm:$0xff]  ;;  %v1536_v7 = vpack.c.bf16 %v1081_v1, %v1079_v63 }
 0x12a   :  { %v227_v25 = vmax.f32 %v181_v20, 0.0  ;;  %v185_v26 = vpop.f32.mrb[3].mxu0  ;;  %v1453_v30 = vpop.f32.mrb[3].mxu1  ;;  %v229_v4 = vmax.f32 %v222_v58, 0.0  ;;  %v1003_v23 = vld [vmem:[#allocation8 + $0x20] sm:$0xff]  ;;  %v1008_v29 = vld [vmem:[#allocation8 + $0x48] sm:$0xff] }
 0x12b   :  { %v228_v28 = vmax.f32 %v183_v22, 0.0  ;;  %v1520_v22 = vpack.c.bf16 %v1065_v12, %v1063_v11  ;;  %v1522_v26 = vpack.c.bf16 %v1070_v19, %v1068_v18  ;;  %v1010_v30 = vld [vmem:[#allocation8 + $0x58] sm:$0xff]  ;;  %v1019_v8 = vld [vmem:[#allocation8 + $0xa0] sm:$0xff]  ;;  %v1088_v19 = vld [vmem:[#allocation8 + $0x2c8] sm:$0xff] }
 0x12c   :  { %v230_v34 = vpack.c.bf16 %v227_v25, %v227_v25  ;;  %v232_v20 = vpack.c.bf16 %v229_v4, %v229_v4  ;;  %v1458_v25 = vpack.c.bf16 %v1006_v17, %v1004_v15  ;;  %v1084_v4 = vld [vmem:[#allocation8 + $0x2a8] sm:$0xff]  ;;  %v1083_v12 = vld [vmem:[#allocation8 + $0x2a0] sm:$0xff]  ;;  %v1085_v15 = vld [vmem:[#allocation8 + $0x2b0] sm:$0xff] }
 0x12d   :  { %v231_v31 = vpack.c.bf16 %v228_v28, %v228_v28  ;;  %v1069_v28 = vld [vmem:[#allocation8 + $0x230] sm:$0xff]  ;;  %v1024_v17 = vld [vmem:[#allocation8 + $0xc8] sm:$0xff]  ;;  %v1026_v18 = vld [vmem:[#allocation8 + $0xd8] sm:$0xff] }
 0x12e   :  { %v1099_v63 = vld [vmem:[#allocation8 + $0x320] sm:$0xff]  ;;  %v1101_v1 = vld [vmem:[#allocation8 + $0x330] sm:$0xff] }
 0x12f   :  { %863 = vmatprep.mubr.bf16.mxu0 %v231_v31  ;;  %945 = vmatprep.mubr.bf16.mxu1 %v231_v31  ;;  %v1072_v31 = vld [vmem:[#allocation8 + $0x248] sm:$0xff] }
 0x130   :  { %864 = vmatmul.mubr.bf16.vlgmr.msra.gmra.mrb[4].mxu0 %v230_v34  ;;  %946 = vmatmul.mubr.bf16.vlgmr.msra.gmra.mrb[4].mxu1 %v230_v34  ;;  %v1524_v34 = vpack.c.bf16 %v1069_v28, %v1067_v27  ;;  %v1087_v27 = vld [vmem:[#allocation8 + $0x2c0] sm:$0xff]  ;;  %v1089_v28 = vld [vmem:[#allocation8 + $0x2d0] sm:$0xff] }
 0x131   :  { %873 = vmatpush1.bf16.msra.mxu0 %v1714_v32  ;;  %955 = vmatpush1.bf16.msra.mxu1 %v1717_v33  ;;  %v1074_v32 = vld [vmem:[#allocation8 + $0x258] sm:$0xff]  ;;  %v1460_v33 = vpack.c.bf16 %v1005_v24, %v1003_v23  ;;  %v1023_v23 = vld [vmem:[#allocation8 + $0xc0] sm:$0xff]  ;;  %v1025_v24 = vld [vmem:[#allocation8 + $0xd0] sm:$0xff] }
 0x132   :  { %874 = vmatprep.subr.bf16.mxu0 %v1722_v35  ;;  %956 = vmatprep.subr.bf16.mxu1 %v1725_v36  ;;  %v1007_v35 = vld [vmem:[#allocation8 + $0x40] sm:$0xff]  ;;  %v1009_v36 = vld [vmem:[#allocation8 + $0x50] sm:$0xff] }
 0x133   :  { %904 = vmatprep.mubr.bf16.mxu0 %v1896_v0  ;;  %986 = vmatprep.mubr.bf16.mxu1 %v1896_v0  ;;  %v1738_v0 = vld [vmem:[#allocation7 + $0x280] ss:$16 sps:$4 sm:$0xff]  }
 0x135   :  { %875 = vmatpush1.bf16.msra.mxu0 %v1720_v37  ;;  %957 = vmatpush1.bf16.msra.mxu1 %v1723_v38  ;;  %v1462_v37 = vpack.c.bf16 %v1010_v30, %v1008_v29  ;;  %v1526_v38 = vpack.c.bf16 %v1074_v32, %v1072_v31  ;;  %v1028_v29 = vld [vmem:[#allocation8 + $0xe8] sm:$0xff]  ;;  %v1030_v30 = vld [vmem:[#allocation8 + $0xf8] sm:$0xff] }
 0x136   :  { %876 = vmatprep.subr.bf16.mxu0 %v1728_v39  ;;  %958 = vmatprep.subr.bf16.mxu1 %v1731_v40  ;;  %v1071_v39 = vld [vmem:[#allocation8 + $0x240] sm:$0xff]  ;;  %v1073_v40 = vld [vmem:[#allocation8 + $0x250] sm:$0xff]  ;;  %v1092_v31 = vld [vmem:[#allocation8 + $0x2e8] sm:$0xff] }
 0x137   :  { %v1094_v32 = vld [vmem:[#allocation8 + $0x2f8] sm:$0xff] }
 0x139   :  { %877 = vmatpush1.bf16.msra.mxu0 %v1726_v41  ;;  %959 = vmatpush1.bf16.msra.mxu1 %v1729_v42  ;;  %v1012_v41 = vld [vmem:[#allocation8 + $0x68] sm:$0xff]  ;;  %v1014_v42 = vld [vmem:[#allocation8 + $0x78] sm:$0xff] }
 0x13a   :  { %878 = vmatprep.subr.bf16.mxu0 %v1734_v43  ;;  %960 = vmatprep.subr.bf16.mxu1 %v1737_v44  ;;  %v1076_v43 = vld [vmem:[#allocation8 + $0x268] sm:$0xff]  ;;  %v1078_v44 = vld [vmem:[#allocation8 + $0x278] sm:$0xff] }
 0x13d   :  { %879 = vmatpush1.bf16.msra.mxu0 %v1732_v45  ;;  %961 = vmatpush1.bf16.msra.mxu1 %v1735_v46  ;;  %v1464_v45 = vpack.c.bf16 %v1009_v36, %v1007_v35  ;;  %v1528_v46 = vpack.c.bf16 %v1073_v40, %v1071_v39  ;;  %v1027_v35 = vld [vmem:[#allocation8 + $0xe0] sm:$0xff]  ;;  %v1029_v36 = vld [vmem:[#allocation8 + $0xf0] sm:$0xff] }
 0x13e   :  { %880 = vmatprep.subr.bf16.mxu0 %v1740_v47  ;;  %962 = vmatprep.subr.bf16.mxu1 %v1743_v48  ;;  %v1011_v47 = vld [vmem:[#allocation8 + $0x60] sm:$0xff]  ;;  %v1013_v48 = vld [vmem:[#allocation8 + $0x70] sm:$0xff] }
 0x13f   :  { %v1091_v39 = vld [vmem:[#allocation8 + $0x2e0] sm:$0xff]  ;;  %v1093_v40 = vld [vmem:[#allocation8 + $0x2f0] sm:$0xff] }
 0x141   :  { %881 = vmatpush1.bf16.msra.mxu0 %v1738_v0  ;;  %963 = vmatpush1.bf16.msra.mxu1 %v1741_v50  ;;  %v1466_v0 = vpack.c.bf16 %v1014_v42, %v1012_v41  ;;  %v1530_v50 = vpack.c.bf16 %v1078_v44, %v1076_v43  ;;  %v1032_v41 = vld [vmem:[#allocation8 + $0x108] sm:$0xff]  ;;  %v1034_v42 = vld [vmem:[#allocation8 + $0x118] sm:$0xff] }
 0x142   :  { %882 = vmatprep.subr.bf16.mxu0 %v1746_v51  ;;  %964 = vmatprep.subr.bf16.mxu1 %v1749_v52  ;;  %v1075_v51 = vld [vmem:[#allocation8 + $0x260] sm:$0xff]  ;;  %v1077_v52 = vld [vmem:[#allocation8 + $0x270] sm:$0xff]  ;;  %v1096_v43 = vld [vmem:[#allocation8 + $0x308] sm:$0xff] }
 0x143   :  { %v1532_v58 = vpack.c.bf16 %v1077_v52, %v1075_v51  ;;  %v1098_v44 = vld [vmem:[#allocation8 + $0x318] sm:$0xff]  ;;  %v1095_v51 = vld [vmem:[#allocation8 + $0x300] sm:$0xff]  ;;  %v1097_v52 = vld [vmem:[#allocation8 + $0x310] sm:$0xff] }
 0x145   :  { %883 = vmatpush1.bf16.msra.mxu0 %v1744_v54  ;;  %965 = vmatpush1.bf16.msra.mxu1 %v1747_v55  ;;  %v1018_v54 = vld [vmem:[#allocation8 + $0x98] sm:$0xff]  ;;  %v1080_v55 = vld [vmem:[#allocation8 + $0x288] sm:$0xff] }
 0x146   :  { %884 = vmatprep.subr.bf16.mxu0 %v1752_v56  ;;  %966 = vmatprep.subr.bf16.mxu1 %v1755_v57  ;;  %v1082_v56 = vld [vmem:[#allocation8 + $0x298] sm:$0xff]  ;;  %v1468_v57 = vpack.c.bf16 %v1013_v48, %v1011_v47  ;;  %v1031_v47 = vld [vmem:[#allocation8 + $0x100] sm:$0xff]  ;;  %v1033_v48 = vld [vmem:[#allocation8 + $0x110] sm:$0xff] }
 0x149   :  { %885 = vmatpush1.bf16.msra.mxu0 %v1750_v59  ;;  %967 = vmatpush1.bf16.msra.mxu1 %v1753_v60  ;;  %v1015_v59 = vld [vmem:[#allocation8 + $0x80] sm:$0xff]  ;;  %v1017_v60 = vld [vmem:[#allocation8 + $0x90] sm:$0xff] }
 0x14a   :  { %886 = vmatprep.subr.bf16.mxu0 %v1758_v61  ;;  %968 = vmatprep.subr.bf16.mxu1 %v1761_v62  ;;  %v1470_v61 = vpack.c.bf16 %v1018_v54, %v1016_v53  ;;  %v1534_v62 = vpack.c.bf16 %v1082_v56, %v1080_v55  ;;  %v1036_v53 = vld [vmem:[#allocation8 + $0x128] sm:$0xff]  ;;  %v1038_v54 = vld [vmem:[#allocation8 + $0x138] sm:$0xff] }
 0x14b   :  { %v1100_v55 = vld [vmem:[#allocation8 + $0x328] sm:$0xff]  ;;  %v1102_v56 = vld [vmem:[#allocation8 + $0x338] sm:$0xff] }
 0x14d   :  { %887 = vmatpush1.bf16.msra.mxu0 %v1756_v5  ;;  %969 = vmatpush1.bf16.msra.mxu1 %v1759_v6  ;;  %v1086_v5 = vld [vmem:[#allocation8 + $0x2b8] sm:$0xff]  ;;  %v1472_v6 = vpack.c.bf16 %v1017_v60, %v1015_v59  ;;  %v1035_v59 = vld [vmem:[#allocation8 + $0x120] sm:$0xff]  ;;  %v1037_v60 = vld [vmem:[#allocation8 + $0x130] sm:$0xff] }
 0x14e   :  { %1455 = vmatprep.subr.bf16.mxu1 %v1454_v9  ;;  %1519 = vmatprep.subr.bf16.mxu0 %v1518_v10  ;;  %v1021_v9 = vld [vmem:[#allocation8 + $0xb0] sm:$0xff]  ;;  %v1474_v10 = vpack.c.bf16 %v1022_v3, %v1020_v2  ;;  %v1538_v11 = vpack.c.bf16 %v1086_v5, %v1084_v4  ;;  %v1040_v2 = vld [vmem:[#allocation8 + $0x148] sm:$0xff]  ;;  %v1042_v3 = vld [vmem:[#allocation8 + $0x158] sm:$0xff] }
 0x14f   :  { %v1104_v4 = vld [vmem:[#allocation8 + $0x348] sm:$0xff]  ;;  %v1106_v5 = vld [vmem:[#allocation8 + $0x358] sm:$0xff] }
 0x150   :  { %905 = vmatmul.mubr.bf16.vlgmr.msra.gmra.mrb[4].mxu0 %v232_v20  ;;  %987 = vmatmul.mubr.bf16.vlgmr.msra.gmra.mrb[4].mxu1 %v232_v20  ;;  %v1090_v20 = vld [vmem:[#allocation8 + $0x2d8] sm:$0xff] }
 0x151   :  { %1457 = vmatpush1.bf16.msra.mxu1 %v1456_v21  ;;  %1521 = vmatpush1.bf16.msra.mxu0 %v1520_v22  ;;  %v1476_v21 = vpack.c.bf16 %v1021_v9, %v1019_v8  ;;  %v1540_v22 = vpack.c.bf16 %v1085_v15, %v1083_v12  ;;  %v1039_v8 = vld [vmem:[#allocation8 + $0x140] sm:$0xff]  ;;  %v1041_v9 = vld [vmem:[#allocation8 + $0x150] sm:$0xff] }
 0x152   :  { %1459 = vmatprep.subr.bf16.mxu1 %v1458_v25  ;;  %1523 = vmatprep.subr.bf16.mxu0 %v1522_v26  ;;  %v1478_v25 = vpack.c.bf16 %v1026_v18, %v1024_v17  ;;  %v1542_v26 = vpack.c.bf16 %v1090_v20, %v1088_v19  ;;  %v1103_v12 = vld [vmem:[#allocation8 + $0x340] sm:$0xff]  ;;  %v1105_v15 = vld [vmem:[#allocation8 + $0x350] sm:$0xff]  ;;  %v1044_v17 = vld [vmem:[#allocation8 + $0x168] sm:$0xff] }
 0x153   :  { %v1046_v18 = vld [vmem:[#allocation8 + $0x178] sm:$0xff]  ;;  %v1108_v19 = vld [vmem:[#allocation8 + $0x368] sm:$0xff] }
 0x154   :  { %v1110_v20 = vld [vmem:[#allocation8 + $0x378] sm:$0xff] }
 0x155   :  { %1461 = vmatpush1.bf16.msra.mxu1 %v1460_v33  ;;  %1525 = vmatpush1.bf16.msra.mxu0 %v1524_v34  ;;  %v1480_v33 = vpack.c.bf16 %v1025_v24, %v1023_v23  ;;  %v1544_v34 = vpack.c.bf16 %v1089_v28, %v1087_v27  ;;  %v1043_v23 = vld [vmem:[#allocation8 + $0x160] sm:$0xff]  ;;  %v1045_v24 = vld [vmem:[#allocation8 + $0x170] sm:$0xff] }
 0x156   :  { %1463 = vmatprep.subr.bf16.mxu1 %v1462_v37  ;;  %1527 = vmatprep.subr.bf16.mxu0 %v1526_v38  ;;  %v1482_v37 = vpack.c.bf16 %v1030_v30, %v1028_v29  ;;  %v1546_v38 = vpack.c.bf16 %v1094_v32, %v1092_v31  ;;  %v1107_v27 = vld [vmem:[#allocation8 + $0x360] sm:$0xff]  ;;  %v1109_v28 = vld [vmem:[#allocation8 + $0x370] sm:$0xff]  ;;  %v1048_v29 = vld [vmem:[#allocation8 + $0x188] sm:$0xff] }
 0x157   :  { %v1050_v30 = vld [vmem:[#allocation8 + $0x198] sm:$0xff]  ;;  %v1112_v31 = vld [vmem:[#allocation8 + $0x388] sm:$0xff] }
 0x158   :  { %v1114_v32 = vld [vmem:[#allocation8 + $0x398] sm:$0xff] }
 0x159   :  { %1465 = vmatpush1.bf16.msra.mxu1 %v1464_v45  ;;  %1529 = vmatpush1.bf16.msra.mxu0 %v1528_v46  ;;  %v1484_v45 = vpack.c.bf16 %v1029_v36, %v1027_v35  ;;  %v1548_v46 = vpack.c.bf16 %v1093_v40, %v1091_v39  ;;  %v1047_v35 = vld [vmem:[#allocation8 + $0x180] sm:$0xff]  ;;  %v1049_v36 = vld [vmem:[#allocation8 + $0x190] sm:$0xff] }
 0x15a   :  { %1467 = vmatprep.subr.bf16.mxu1 %v1466_v0  ;;  %1531 = vmatprep.subr.bf16.mxu0 %v1530_v50  ;;  %v1486_v0 = vpack.c.bf16 %v1034_v42, %v1032_v41  ;;  %v1550_v50 = vpack.c.bf16 %v1098_v44, %v1096_v43  ;;  %v1111_v39 = vld [vmem:[#allocation8 + $0x380] sm:$0xff]  ;;  %v1113_v40 = vld [vmem:[#allocation8 + $0x390] sm:$0xff]  ;;  %v1052_v41 = vld [vmem:[#allocation8 + $0x1a8] sm:$0xff] }
 0x15b   :  { %v1054_v42 = vld [vmem:[#allocation8 + $0x1b8] sm:$0xff]  ;;  %v1116_v43 = vld [vmem:[#allocation8 + $0x3a8] sm:$0xff] }
 0x15c   :  { %v1118_v44 = vld [vmem:[#allocation8 + $0x3b8] sm:$0xff] }
 0x15d   :  { %1469 = vmatpush1.bf16.msra.mxu1 %v1468_v57  ;;  %1533 = vmatpush1.bf16.msra.mxu0 %v1532_v58  ;;  %v1488_v57 = vpack.c.bf16 %v1033_v48, %v1031_v47  ;;  %v1552_v58 = vpack.c.bf16 %v1097_v52, %v1095_v51  ;;  %v1051_v47 = vld [vmem:[#allocation8 + $0x1a0] sm:$0xff]  ;;  %v1053_v48 = vld [vmem:[#allocation8 + $0x1b0] sm:$0xff] }
 0x15e   :  { %1471 = vmatprep.subr.bf16.mxu1 %v1470_v61  ;;  %1535 = vmatprep.subr.bf16.mxu0 %v1534_v62  ;;  %v1490_v61 = vpack.c.bf16 %v1038_v54, %v1036_v53  ;;  %v1554_v62 = vpack.c.bf16 %v1102_v56, %v1100_v55  ;;  %v1115_v51 = vld [vmem:[#allocation8 + $0x3a0] sm:$0xff]  ;;  %v1117_v52 = vld [vmem:[#allocation8 + $0x3b0] sm:$0xff]  ;;  %v1056_v53 = vld [vmem:[#allocation8 + $0x1c8] sm:$0xff] }
 0x15f   :  { %v1058_v54 = vld [vmem:[#allocation8 + $0x1d8] sm:$0xff]  ;;  %v1120_v55 = vld [vmem:[#allocation8 + $0x3c8] sm:$0xff] }
 0x160   :  { %v1122_v56 = vld [vmem:[#allocation8 + $0x3d8] sm:$0xff] }
 0x161   :  { %1473 = vmatpush1.bf16.msra.mxu1 %v1472_v6  ;;  %1537 = vmatpush1.bf16.msra.mxu0 %v1536_v7  ;;  %v1492_v6 = vpack.c.bf16 %v1037_v60, %v1035_v59  ;;  %v1556_v7 = vpack.c.bf16 %v1101_v1, %v1099_v63  ;;  %v1510_v59 = vpack.c.bf16 %v1058_v54, %v1056_v53  ;;  %v1119_v63 = vld [vmem:[#allocation8 + $0x3c0] sm:$0xff] }
 0x162   :  { %1475 = vmatprep.subr.bf16.mxu1 %v1474_v10  ;;  %1539 = vmatprep.subr.bf16.mxu0 %v1538_v11  ;;  %v1494_v10 = vpack.c.bf16 %v1042_v3, %v1040_v2  ;;  %v1558_v11 = vpack.c.bf16 %v1106_v5, %v1104_v4  ;;  %v1574_v60 = vpack.c.bf16 %v1122_v56, %v1120_v55  ;;  %v1121_v2 = vld [vmem:[#allocation8 + $0x3d0] sm:$0xff]  ;;  %v1060_v4 = vld [vmem:[#allocation8 + $0x1e8] sm:$0xff]  ;;  %v1062_v5 = vld [vmem:[#allocation8 + $0x1f8] sm:$0xff] }
 0x163   :  { %v1576_v3 = vpack.c.bf16 %v1121_v2, %v1119_v63  ;;  %v1285_v54 = vld [vmem:[%s2049_s7] sm:$0xff] }
 0x164   :  { %v1288_v63 = vmul.f32 -0.5, %v1285_v54 }
 0x165   :  { %1477 = vmatpush1.bf16.msra.mxu1 %v1476_v21  ;;  %1541 = vmatpush1.bf16.msra.mxu0 %v1540_v22  ;;  %v1496_v21 = vpack.c.bf16 %v1041_v9, %v1039_v8  ;;  %v1560_v22 = vpack.c.bf16 %v1105_v15, %v1103_v12  ;;  %v1126_v8 = vld [vmem:[#allocation8 + $0x3f8] sm:$0xff]  ;;  %v1059_v9 = vld [vmem:[#allocation8 + $0x1e0] sm:$0xff] }
 0x166   :  { %1479 = vmatprep.subr.bf16.mxu1 %v1478_v25  ;;  %1543 = vmatprep.subr.bf16.mxu0 %v1542_v26  ;;  %v1498_v25 = vpack.c.bf16 %v1046_v18, %v1044_v17  ;;  %v1562_v26 = vpack.c.bf16 %v1110_v20, %v1108_v19  ;;  %v1123_v15 = vld [vmem:[#allocation8 + $0x3e0] sm:$0xff]  ;;  %v1125_v17 = vld [vmem:[#allocation8 + $0x3f0] sm:$0xff]  ;;  %v345_v20 = vsub.s32 3, %v1994_v13 }
 0x167   :  { %v1580_v18 = vpack.c.bf16 %v1125_v17, %v1123_v15  ;;  %v329_v19 = vld [vmem:[%s2046_s4] sm:$0xf] }
 0x169   :  { %1481 = vmatpush1.bf16.msra.mxu1 %v1480_v33  ;;  %1545 = vmatpush1.bf16.msra.mxu0 %v1544_v34  ;;  %v1500_v33 = vpack.c.bf16 %v1045_v24, %v1043_v23  ;;  %v1564_v34 = vpack.c.bf16 %v1109_v28, %v1107_v27  ;;  %v338_v23 = vrot.slane %v329_v19, %v2003_v16 }
 0x16a   :  { %1483 = vmatprep.subr.bf16.mxu1 %v1482_v37  ;;  %1547 = vmatprep.subr.bf16.mxu0 %v1546_v38  ;;  %v1502_v37 = vpack.c.bf16 %v1050_v30, %v1048_v29  ;;  %v1566_v38 = vpack.c.bf16 %v1114_v32, %v1112_v31  ;;  %v346_v24 = vrot.slane %v329_v19, %v345_v20 }
 0x16d   :  { %1485 = vmatpush1.bf16.msra.mxu1 %v1484_v45  ;;  %1549 = vmatpush1.bf16.msra.mxu0 %v1548_v46  ;;  %v1504_v45 = vpack.c.bf16 %v1049_v36, %v1047_v35  ;;  %v1568_v46 = vpack.c.bf16 %v1113_v40, %v1111_v39 }
 0x16e   :  { %1487 = vmatprep.subr.bf16.mxu1 %v1486_v0  ;;  %1551 = vmatprep.subr.bf16.mxu0 %v1550_v50  ;;  %v1506_v0 = vpack.c.bf16 %v1054_v42, %v1052_v41  ;;  %v1570_v50 = vpack.c.bf16 %v1118_v44, %v1116_v43 }
 0x171   :  { %1489 = vmatpush1.bf16.msra.mxu1 %v1488_v57  ;;  %1553 = vmatpush1.bf16.msra.mxu0 %v1552_v58  ;;  %v1508_v57 = vpack.c.bf16 %v1053_v48, %v1051_v47  ;;  %v1572_v58 = vpack.c.bf16 %v1117_v52, %v1115_v51 }
 0x172   :  { %1491 = vmatprep.subr.bf16.mxu1 %v1490_v61  ;;  %1555 = vmatprep.subr.bf16.mxu0 %v1554_v62  ;;  %v1055_v61 = vld [vmem:[#allocation8 + $0x1c0] sm:$0xff]  ;;  %v1057_v62 = vld [vmem:[#allocation8 + $0x1d0] sm:$0xff] }
 0x173   :  { %v1512_v1 = vpack.c.bf16 %v1057_v62, %v1055_v61 }
 0x175   :  { %1493 = vmatpush1.bf16.msra.mxu1 %v1492_v6  ;;  %1557 = vmatpush1.bf16.msra.mxu0 %v1556_v7  ;;  %v1124_v6 = vld [vmem:[#allocation8 + $0x3e8] sm:$0xff]  ;;  %v1514_v7 = vpack.c.bf16 %v1062_v5, %v1060_v4  ;;  %v1289_v4 = vmul.f32 %v1288_v63, %v1285_v54 }
 0x176   :  { %1495 = vmatprep.subr.bf16.mxu1 %v1494_v10  ;;  %1559 = vmatprep.subr.bf16.mxu0 %v1558_v11  ;;  %v1061_v10 = vld [vmem:[#allocation8 + $0x1f0] sm:$0xff]  ;;  %v1578_v11 = vpack.c.bf16 %v1126_v8, %v1124_v6 }
 0x177   :  { %v1516_v12 = vpack.c.bf16 %v1061_v10, %v1059_v9 }
 0x179   :  { %1497 = vmatpush1.bf16.msra.mxu1 %v1496_v21  ;;  %1561 = vmatpush1.bf16.msra.mxu0 %v1560_v22  ;;  %v334_v21 = vrot.slane %v329_v19, %v1997_v14  ;;  %v342_v22 = vrot.slane %v329_v19, %v105_v49  ;;  %v1127_v49 = vld [vmem:[%s2048_s6] sm:$0x3]  ;;  %s1899_s6 = smov [#allocation10]  }
 0x17a   :  { %1499 = vmatprep.subr.bf16.mxu1 %v1498_v25  ;;  %1563 = vmatprep.subr.bf16.mxu0 %v1562_v26  ;;  %v1132_v40 = vrot.slane %v1127_v49, %v1997_v14  ;;  %v1136_v41 = vrot.slane %v1127_v49, %v2003_v16  ;;  %s1327_s7 = sshll.u32 %s1899_s6, 4  ;;  %s1328_s7 = int_to_ptr.vmem [resolvable:$true] %s1327_s7 }
 0x17b   :  { %s1858_s14 = scalar_lea.vmem %s1328_s7, 128  ;;  %p1863_p5 = scmp.lt.s32.totalorder %s1328_s7, %s1328_s7 }
 0x17c   :  { %p1859_p4 = scmp.ne.s32.totalorder %s1328_s7, %s1858_s14  ;;  %p1864_p6 = scmp.lt.s32.totalorder %s1858_s14, %s1858_s14 }
 0x17d   :  { %1501 = vmatpush1.bf16.msra.mxu1 %v1500_v33  ;;  %1565 = vmatpush1.bf16.msra.mxu0 %v1564_v34 }
 0x17e   :  { %1503 = vmatprep.subr.bf16.mxu1 %v1502_v37  ;;  %1567 = vmatprep.subr.bf16.mxu0 %v1566_v38  ;;  %p1865_p7 = por %p1864_p6, %p1863_p5 }
 0x180   :  { %p1866_p8 = pnand %p1865_p7, %p1859_p4 }
 0x181   :  { %1505 = vmatpush1.bf16.msra.mxu1 %v1504_v45  ;;  %1569 = vmatpush1.bf16.msra.mxu0 %v1568_v46 }
 0x182   :  { %1507 = vmatprep.subr.bf16.mxu1 %v1506_v0  ;;  %1571 = vmatprep.subr.bf16.mxu0 %v1570_v50 }
 0x185   :  { %1509 = vmatpush1.bf16.msra.mxu1 %v1508_v57  ;;  %1573 = vmatpush1.bf16.msra.mxu0 %v1572_v58 }
 0x186   :  { %1511 = vmatprep.subr.bf16.mxu1 %v1510_v59  ;;  %1575 = vmatprep.subr.bf16.mxu0 %v1574_v60 }
 0x189   :  { %1513 = vmatpush1.bf16.msra.mxu1 %v1512_v1  ;;  %1577 = vmatpush1.bf16.msra.mxu0 %v1576_v3 }
 0x18a   :  { %1515 = vmatprep.subr.bf16.mxu1 %v1514_v7  ;;  %1579 = vmatprep.subr.bf16.mxu0 %v1578_v11 }
 0x18d   :  { %1517 = vmatpush1.bf16.msra.mxu1 %v1516_v12  ;;  %1581 = vmatpush1.bf16.msra.mxu0 %v1580_v18 }
 0x223   :  { %v906_v25 = vpop.f32.mrb[4].mxu0  ;;  %v988_v26 = vpop.f32.mrb[4].mxu1 }
 0x224   :  { %v1582_v27 = vadd.f32 %v906_v25, %v334_v21  ;;  %v1584_v28 = vadd.f32 %v988_v26, %v342_v22  ;;  %v908_v29 = vpop.f32.mrb[5].mxu0  ;;  %v990_v30 = vpop.f32.mrb[5].mxu1 }
 0x225   :  { %v1583_v31 = vadd.f32 %v908_v29, %v338_v23  ;;  %v1585_v32 = vadd.f32 %v990_v30, %v346_v24  ;;  %v910_v33 = vpop.f32.mrb[6].mxu0  ;;  %v992_v34 = vpop.f32.mrb[6].mxu1 }
 0x226   :  { %v911_v35 = vpop.f32.mrb[7].mxu0  ;;  %v993_v36 = vpop.f32.mrb[7].mxu1  ;;  %v995_v39 = vmax.f32 %v1582_v27, 0.0  ;;  %v997_v13 = vmax.f32 %v1584_v28, 0.0 }
 0x227   :  { %v996_v37 = vmax.f32 %v1583_v31, 0.0  ;;  %v998_v38 = vmax.f32 %v1585_v32, 0.0 }
 0x229   :  { %1203 = vmatprep.mubr.f32.mxu1 %v996_v37  ;;  %1274 = vmatprep.mubr.f32.mxu0 %v998_v38 }
 0x22a   :  { %1204 = vmatmul.mubr.f32.vlgmr.msra.gmra.mrb[8].mxu1 %v995_v39  ;;  %1275 = vmatmul.mubr.f32.vlgmr.msra.gmra.mrb[8].mxu0 %v997_v13 }
 0x2fd   :  { %v1205_v42 = vpop.f32.mrb[8].mxu1  ;;  %v1276_v43 = vpop.f32.mrb[8].mxu0 }
 0x2fe   :  { %v1206_v44 = vadd.f32 %v1205_v42, %v1132_v40  ;;  %v1207_v45 = vpop.f32.mrb[9].mxu1  ;;  %v1278_v46 = vpop.f32.mrb[9].mxu0 }
 0x2ff   :  { %v1208_v47 = vadd.f32 %v1207_v45, %v1136_v41 }
 0x300   :  { %v1277_v48 = vadd.f32 %v1276_v43, %v1206_v44 }
 0x301   :  { %v1279_v0 = vadd.f32 %v1278_v46, %v1208_v47 }
 0x303   :  { %v1281_v50 = vmax.f32 %v1279_v0, -20.0 }
 0x305   :  { %v1282_v51 = vmin.f32 %v1281_v50, 2.0 }
 0x307   :  { %v1283_v52 = vmul.f32 1.442695, %v1282_v51  ;;  %v1290_v10 = vsub.f32 %v1289_v4, %v1282_v51 }
 0x309   :  { %1762 = vpow2.f32 %v1283_v52  ;;  %v1442_v17 = vadd.f32 -0.9189385, %v1290_v10 }
 0x313   :  { %v1763_v53 = vpop.eup %1762 }
 0x314   :  { %v1286_v14 = vmul.f32 %v1763_v53, %v1285_v54 }
 0x316   :  { %v1287_v55 = vadd.f32 %v1286_v14, %v1277_v48 }
 0x318   :  { %v1294_v16 = vmul.f32 -2.0, %v1287_v55  ;;  %1764 = vtanh.f32 %v1287_v55  ;;  %v1292_v7 = vmul.f32 2.0, %v1287_v55 }
 0x31a   :  { %v1296_v56 = vand.u32 2147483647, %v1294_v16  ;;  %v1295_v8 = vmax.f32 %v1294_v16, 0.0  ;;  %v1293_v12 = vsub.f32 1.3862944, %v1292_v7 }
 0x31c   :  { %v1297_v57 = vsub.f32 0.0, %v1296_v56 }
 0x31e   :  { %v1298_v58 = vmul.f32 1.442695, %v1297_v57 }
 0x320   :  { %1766 = vpow2.f32 %v1298_v58 }
 0x322   :  { %v1765_v59 = vpop.eup %1764 }
 0x323   :  { %1314 = vst.msk [vmem:[#allocation10] sm:$0xff] %vm1313_vm2, %v1765_v59 }
 0x32a   :  { %v1767_v60 = vpop.eup %1766 }
 0x32b   :  { %v1300_v61 = vadd.f32 1.0, %v1767_v60  ;;  %v1303_v62 = vmul.f32 -0.5, %v1767_v60  ;;  %v1306_v2 = vand.u32 2147483647, %v1767_v60 }
 0x32d   :  { %1768 = vlog2.f32 %v1300_v61  ;;  %v1304_v1 = vadd.f32 1.0, %v1303_v62  ;;  %vm1307_vm3 = vcmp.lt.f32.partialorder %v1306_v2, 0.0004427343 }
 0x32f   :  { %v1305_v6 = vmul.f32 %v1767_v60, %v1304_v1 }
 0x337   :  { %v1769_v3 = vpop.eup %1768 }
 0x338   :  { %v1302_v5 = vmul.f32 0.6931472, %v1769_v3 }
 0x33a   :  { %v1308_v9 = vsel %vm1307_vm3, %v1305_v6, %v1302_v5 }
 0x33b   :  { %v1309_v11 = vadd.f32 %v1308_v9, %v1295_v8 }
 0x33d   :  { %v1310_v15 = vmul.f32 2.0, %v1309_v11 }
 0x33f   :  { %v1311_v18 = vsub.f32 %v1293_v12, %v1310_v15 }
 0x341   :  { %v1315_v19 = vsub.f32 %v1442_v17, %v1311_v18 }
 0x343   :  { %v1316_v20 = vsel %vm1313_vm2, %v1315_v19, 0.0 }
 0x344   :  { %1317 = vadd.xlane.f32.xlu0 %v1316_v20 }
 0x3d1   :  { %v1318_v21 = vpop.xlane.xlu0 %1317 }
 0x3d2   :  { %1320 = vst.msk [vmem:[#allocation10] sm:$0xff] %vm1319_vm4, %v1318_v21 }
 0x3d3   :  { %1869 = shalt.err (!%p1866_p8)
}
 0x3d4   :  { %s1870_s17 = scalar_lea.hbm %s2050_s8, 128 }
 0x3d5   :  { %p1871_p9 = scmp.ne.s32.totalorder %s2050_s8, %s1870_s17  ;;  %p1874_p10 = scmp.lt.u32.totalorder %s1870_s17, %s2050_s8 }
 0x3d7   :  { %p1876_p11 = pnand %p1874_p10, %p1871_p9 }
 0x3d9   :  { %1879 = shalt.err (!%p1876_p11)
}
 0x3da   :  { %1330 = dma.vmem_to_hbm [thread:$0]  %s1328_s7, 128, %s2050_s8, [#allocation4]  }
 0x3db   :  { %1886 = dma.done.wait [#allocation4], 128  }
 0x3dc   :  { %1887 = vsyncadd [#allocation4], 4294967168 }
 0x3dd   :  { %1334 = vsyncpa [#allocation3], 1 }
 0x3de   :  { %1335 = vsyncpa [#allocation6], 1 }
 0x3df   :  { %1336 = vsyncpa [#allocation9], 1 }
 0x3e0   :  { %1337 = vsyncpa [#allocation4], 1 }

</bundles_post_ra>
